<compile_context>
chip_gen: v7x
topology: tpu7x:2x2x1
jax: 0.10.0
libtpu: 0.0.40
codegen_flags: <defaults>
</compile_context>

<pallas_src>
import jax
import jax.numpy as jnp
from jax import lax
from jax.experimental import pallas as pl
from jax.experimental.pallas import tpu as pltpu


_MIN_STEPS_PER_CALL = 8       # smallest padded bucket
_MAX_STEPS_PER_CALL = 8192    # segment size; 2*8192*4 B = 64 KiB of SMEM per operand
_UNROLL = 8                   # bounded unroll inside the kernel loop


def _next_pow2(n: int) -> int:
    n = int(n)
    return 1 if n <= 1 else 1 << (n - 1).bit_length()


def _dnnc_step_scalar(a, b, s0, s1):
    """One DNNC controller step, branchless.

    The reference's sequential if/elif chain over (a, b) collapses to:
        is_push = (a >= 0.5) & (a >= b)
        is_pop  = (b >= 0.5) & (b >  a)
    (disjoint; everything else is NoOp).  Only the final selects on (s0, s1)
    sit on the loop-carried critical path.
    """
    thr = jnp.float32(0.5)
    one = jnp.float32(1.0)
    zero = jnp.float32(0.0)

    is_push = (a >= thr) & (a >= b)
    is_pop = (b >= thr) & (b > a)

    # Push:               out0 = s0 + 1
    # Pop with s0 > 0:    out0 = s0 - 1
    # Pop with s0 == 0:   out1 = s1 + 1
    out0 = jnp.where(is_push, s0 + one,
                     jnp.where(is_pop & (s0 > zero), s0 - one, s0))
    out1 = jnp.where(is_pop & (s0 == zero), s1 + one, s1)
    return out0, out1


def _dnnc_seq_kernel(xs_ref, state0_ref, out_ref):
    """Process all controller steps of one segment in a single kernel launch.

    xs_ref    : (2*T,) f32 SMEM, flat [a0, b0, a1, b1, ...]
    state0_ref: (2,)   f32 SMEM, initial [stack_depth, false_pop_count]
    out_ref   : (2*T,) f32 SMEM, flat state after each step
    """
    n_steps = xs_ref.shape[0] // 2

    def body(t, carry):
        s0, s1 = carry
        a = xs_ref[2 * t]
        b = xs_ref[2 * t + 1]
        o0, o1 = _dnnc_step_scalar(a, b, s0, s1)
        out_ref[2 * t] = o0
        out_ref[2 * t + 1] = o1
        return (o0, o1)

    # State carried in scalar registers; bounded unroll keeps code size small
    # while giving the 2-wide scalar issue enough independent predicate work.
    lax.fori_loop(0, n_steps, body, (state0_ref[0], state0_ref[1]),
                  unroll=_UNROLL)


def _dnnc_segment_impl(x_seg, state0):
    """x_seg: (T_pad, 2) f32; state0: (2,) f32 -> (T_pad, 2) per-step states."""
    n = x_seg.shape[0]
    xs_flat = x_seg.astype(jnp.float32).reshape(2 * n)
    state0 = state0.astype(jnp.float32)
    out_flat = pl.pallas_call(
        _dnnc_seq_kernel,
        out_shape=jax.ShapeDtypeStruct((2 * n,), jnp.float32),
        in_specs=[
            pl.BlockSpec(memory_space=pltpu.SMEM),   # xs (flat 1-D: no (8,128) padding)
            pl.BlockSpec(memory_space=pltpu.SMEM),   # initial state
        ],
        out_specs=pl.BlockSpec(memory_space=pltpu.SMEM),
        input_output_aliases={0: 0},                 # out may reuse xs's buffer
    )(xs_flat, state0)
    return out_flat.reshape(n, 2)


# One jitted executable per (bucketed) segment length.
_dnnc_segment = jax.jit(_dnnc_segment_impl)


@jax.jit
def dnnc_step(x, state):
    """Single controller step (DNNC.apply) as plain fused jnp scalar ops.

    Intentionally NOT a pallas_call: per-step custom-call dispatch would be
    10-100x the work (perf feedback #1); XLA fuses this into the caller graph.
    """
    x = jnp.asarray(x, dtype=jnp.float32)
    state = jnp.asarray(state, dtype=jnp.float32)
    o0, o1 = _dnnc_step_scalar(x[0], x[1], state[0], state[1])
    return jnp.stack([o0, o1])


def dnnc_sequence(xs, state0, *, max_steps_per_call=_MAX_STEPS_PER_CALL):
    """Run T controller steps. xs: (T, 2); state0: (2,) -> (T, 2) per-step states.

    The sequence is split into <= max_steps_per_call segments (bounds SMEM),
    each segment length is padded to a power-of-two bucket with (0, 0) rows
    (NoOp => state unchanged) so distinct T's reuse the same compiled kernel,
    and the (2,) state is carried between segment calls.
    """
    xs = jnp.asarray(xs, dtype=jnp.float32)
    state = jnp.asarray(state0, dtype=jnp.float32)
    T = int(xs.shape[0])
    if T == 0:
        return jnp.zeros((0, 2), dtype=jnp.float32)
    max_steps_per_call = max(_MIN_STEPS_PER_CALL, _next_pow2(max_steps_per_call))

    outs = []
    start = 0
    while start < T:
        seg = min(max_steps_per_call, T - start)
        seg_padded = max(_MIN_STEPS_PER_CALL, _next_pow2(seg))
        x_seg = xs[start:start + seg]
        if seg_padded != seg:
            # Padded rows are (0, 0): a < 0.5 and b < 0.5 => NoOp, so the
            # carried state is untouched by the padding.
            x_seg = jnp.concatenate(
                [x_seg, jnp.zeros((seg_padded - seg, 2), dtype=jnp.float32)],
                axis=0)
        out_seg = _dnnc_segment(x_seg, state)
        outs.append(out_seg[:seg])
        state = out_seg[seg - 1]            # state after the last *real* step
        start += seg
    return outs[0] if len(outs) == 1 else jnp.concatenate(outs, axis=0)


def dnnc_forward(x, state):
    """Single-step forward (matches DNNC.apply(input, state)); shapes (2,), (2,)."""
    return dnnc_step(x, state)


class DNNCNN:
    """JAX/Pallas port of the PyTorch DNNCNN module (stateful stack controller)."""

    def __init__(self):
        self.stack_depth = jnp.float32(0.0)
        self.false_pop_count = jnp.float32(0.0)

    def reset(self):
        self.stack_depth = jnp.float32(0.0)
        self.false_pop_count = jnp.float32(0.0)

    def editDNNCState(self, new_stack_depth, new_false_pop_count):
        self.stack_depth = jnp.float32(max(float(new_stack_depth), 0.0))
        self.false_pop_count = jnp.float32(max(float(new_false_pop_count), 0.0))

    def forward(self, x, y=None):
        if y is None:
            y = jnp.stack([self.stack_depth, self.false_pop_count]).astype(jnp.float32)
        out = dnnc_forward(x, y)
        # Mirror the PyTorch module: reset, then accumulate the new state.
        self.reset()
        self.stack_depth = self.stack_depth + out[0]
        self.false_pop_count = self.false_pop_count + out[1]
        return out

    __call__ = forward

    def forward_sequence(self, xs):
        """Amortized path: all T steps via segmented pallas_call launches."""
        state0 = jnp.stack([self.stack_depth, self.false_pop_count]).astype(jnp.float32)
        outs = dnnc_sequence(xs, state0)
        self.reset()
        self.stack_depth = self.stack_depth + outs[-1, 0]
        self.false_pop_count = self.false_pop_count + outs[-1, 1]
        return outs


def _reference_forward(inp, state):
    """Pure-Python transcription of the PyTorch DNNC.forward (for checking)."""
    a, b = float(inp[0]), float(inp[1])
    s0, s1 = float(state[0]), float(state[1])
    out = [s0, s1]
    push, pop, op = 0, 0, 'NoOp'
    if a < 0.5:
        push = 0
    elif a >= 0.5 and a < b:
        push, pop, op = 0, 1, 'Pop'
    elif a >= 0.5 and a >= b:
        push, pop, op = 1, 0, 'Push'
    if b < 0.5:
        pop = 0
    elif b >= 0.5 and b < a:
        pop, push, op = 0, 1, 'Push'
    elif b >= 0.5 and b > a:
        pop, push, op = 1, 0, 'Pop'
    if push == 0 and pop == 0:
        op = 'NoOp'
    if op == 'Push':
        out[0] = s0 + 1
    elif op == 'Pop':
        if s0 > 0:
            out[0] = s0 - 1
        elif s0 == 0:
            out[1] = s1 + 1
    return out


if __name__ == "__main__":
    state0 = jnp.zeros((2,), dtype=jnp.float32)

    # ---- Amortized sequence path: one pallas_call over all T steps ----
    T = 8
    xs = jax.random.uniform(jax.random.PRNGKey(0), (T, 2), dtype=jnp.float32)
    outs = jax.block_until_ready(dnnc_sequence(xs, state0))

    xs_host = jax.device_get(xs)
    ref_state = [0.0, 0.0]
    for t in range(T):
        ref_state = _reference_forward(list(xs_host[t]), ref_state)
        assert abs(float(outs[t, 0]) - ref_state[0]) < 1e-6, (t, outs[t], ref_state)
        assert abs(float(outs[t, 1]) - ref_state[1]) < 1e-6, (t, outs[t], ref_state)

    # ---- Longer sequence: exercises bucket padding + cross-segment carry ----
    T2 = 200
    xs2 = jax.random.uniform(jax.random.PRNGKey(1), (T2, 2), dtype=jnp.float32)
    outs2 = jax.block_until_ready(
        dnnc_sequence(xs2, state0, max_steps_per_call=128))
    xs2_host = jax.device_get(xs2)
    ref_state = [0.0, 0.0]
    for t in range(T2):
        ref_state = _reference_forward(list(xs2_host[t]), ref_state)
        assert abs(float(outs2[t, 0]) - ref_state[0]) < 1e-6, (t, outs2[t], ref_state)
        assert abs(float(outs2[t, 1]) - ref_state[1]) < 1e-6, (t, outs2[t], ref_state)

    # ---- Stateful module path (single-step, fused jnp; original semantics) ----
    model = DNNCNN()
    keys = jax.random.split(jax.random.PRNGKey(2), 4)
    ref_state = [0.0, 0.0]
    last = None
    for k in keys:
        x = jax.random.uniform(k, (2,), dtype=jnp.float32)
        out = model(x)
        ref_state = _reference_forward(list(jax.device_get(x)), ref_state)
        assert abs(float(out[0]) - ref_state[0]) < 1e-6, (out, ref_state)
        assert abs(float(out[1]) - ref_state[1]) < 1e-6, (out, ref_state)
        last = out

    jax.block_until_ready(last)
    print("KERNEL_OK")
</pallas_src>

<mosaic_0001>
module attributes {stable_mosaic.version = 11 : i64} {
  func.func @_dnnc_seq_kernel(%arg0: memref<16xf32, #tpu.memory_space<smem>>, %arg1: memref<2xf32, #tpu.memory_space<smem>>, %arg2: memref<16xf32, #tpu.memory_space<smem>>) attributes {dimension_semantics = [], scalar_prefetch = 0 : i64, scratch_operands = 0 : i64, tpu.core_type = #tpu.core_type<tc>} {
    %c0 = arith.constant 0 : index
    %0 = memref.load %arg1[%c0] : memref<2xf32, #tpu.memory_space<smem>>
    %c1 = arith.constant 1 : index
    %1 = memref.load %arg1[%c1] : memref<2xf32, #tpu.memory_space<smem>>
    %c0_i32 = arith.constant 0 : i32
    %c2_i32 = arith.constant 2 : i32
    %2 = arith.muli %c2_i32, %c0_i32 : i32
    %3 = arith.index_cast %2 : i32 to index
    %4 = memref.load %arg0[%3] : memref<16xf32, #tpu.memory_space<smem>>
    %c2_i32_0 = arith.constant 2 : i32
    %5 = arith.muli %c2_i32_0, %c0_i32 : i32
    %c1_i32 = arith.constant 1 : i32
    %6 = arith.addi %5, %c1_i32 : i32
    %7 = arith.index_cast %6 : i32 to index
    %8 = memref.load %arg0[%7] : memref<16xf32, #tpu.memory_space<smem>>
    %cst = arith.constant 5.000000e-01 : f32
    %9 = arith.cmpf oge, %4, %cst : f32
    %10 = arith.cmpf oge, %4, %8 : f32
    %11 = arith.andi %9, %10 : i1
    %cst_1 = arith.constant 5.000000e-01 : f32
    %12 = arith.cmpf oge, %8, %cst_1 : f32
    %13 = arith.cmpf ogt, %8, %4 : f32
    %14 = arith.andi %12, %13 : i1
    %cst_2 = arith.constant 1.000000e+00 : f32
    %15 = arith.addf %0, %cst_2 : f32
    %cst_3 = arith.constant 0.000000e+00 : f32
    %16 = arith.cmpf ogt, %0, %cst_3 : f32
    %17 = arith.andi %14, %16 : i1
    %cst_4 = arith.constant 1.000000e+00 : f32
    %18 = arith.subf %0, %cst_4 : f32
    %19 = arith.select %17, %18, %0 : f32
    %20 = arith.select %11, %15, %19 : f32
    %cst_5 = arith.constant 0.000000e+00 : f32
    %21 = arith.cmpf oeq, %0, %cst_5 : f32
    %22 = arith.andi %14, %21 : i1
    %cst_6 = arith.constant 1.000000e+00 : f32
    %23 = arith.addf %1, %cst_6 : f32
    %24 = arith.select %22, %23, %1 : f32
    %c2_i32_7 = arith.constant 2 : i32
    %25 = arith.muli %c2_i32_7, %c0_i32 : i32
    %26 = arith.index_cast %25 : i32 to index
    %27 = memref.load %arg2[%26] : memref<16xf32, #tpu.memory_space<smem>>
    memref.store %20, %arg2[%26] : memref<16xf32, #tpu.memory_space<smem>>
    %c2_i32_8 = arith.constant 2 : i32
    %28 = arith.muli %c2_i32_8, %c0_i32 : i32
    %c1_i32_9 = arith.constant 1 : i32
    %29 = arith.addi %28, %c1_i32_9 : i32
    %30 = arith.index_cast %29 : i32 to index
    %31 = memref.load %arg2[%30] : memref<16xf32, #tpu.memory_space<smem>>
    memref.store %24, %arg2[%30] : memref<16xf32, #tpu.memory_space<smem>>
    %c1_i32_10 = arith.constant 1 : i32
    %c2_i32_11 = arith.constant 2 : i32
    %32 = arith.muli %c2_i32_11, %c1_i32_10 : i32
    %33 = arith.index_cast %32 : i32 to index
    %34 = memref.load %arg0[%33] : memref<16xf32, #tpu.memory_space<smem>>
    %c2_i32_12 = arith.constant 2 : i32
    %35 = arith.muli %c2_i32_12, %c1_i32_10 : i32
    %c1_i32_13 = arith.constant 1 : i32
    %36 = arith.addi %35, %c1_i32_13 : i32
    %37 = arith.index_cast %36 : i32 to index
    %38 = memref.load %arg0[%37] : memref<16xf32, #tpu.memory_space<smem>>
    %cst_14 = arith.constant 5.000000e-01 : f32
    %39 = arith.cmpf oge, %34, %cst_14 : f32
    %40 = arith.cmpf oge, %34, %38 : f32
    %41 = arith.andi %39, %40 : i1
    %cst_15 = arith.constant 5.000000e-01 : f32
    %42 = arith.cmpf oge, %38, %cst_15 : f32
    %43 = arith.cmpf ogt, %38, %34 : f32
    %44 = arith.andi %42, %43 : i1
    %cst_16 = arith.constant 1.000000e+00 : f32
    %45 = arith.addf %20, %cst_16 : f32
    %cst_17 = arith.constant 0.000000e+00 : f32
    %46 = arith.cmpf ogt, %20, %cst_17 : f32
    %47 = arith.andi %44, %46 : i1
    %cst_18 = arith.constant 1.000000e+00 : f32
    %48 = arith.subf %20, %cst_18 : f32
    %49 = arith.select %47, %48, %20 : f32
    %50 = arith.select %41, %45, %49 : f32
    %cst_19 = arith.constant 0.000000e+00 : f32
    %51 = arith.cmpf oeq, %20, %cst_19 : f32
    %52 = arith.andi %44, %51 : i1
    %cst_20 = arith.constant 1.000000e+00 : f32
    %53 = arith.addf %24, %cst_20 : f32
    %54 = arith.select %52, %53, %24 : f32
    %c2_i32_21 = arith.constant 2 : i32
    %55 = arith.muli %c2_i32_21, %c1_i32_10 : i32
    %56 = arith.index_cast %55 : i32 to index
    %57 = memref.load %arg2[%56] : memref<16xf32, #tpu.memory_space<smem>>
    memref.store %50, %arg2[%56] : memref<16xf32, #tpu.memory_space<smem>>
    %c2_i32_22 = arith.constant 2 : i32
    %58 = arith.muli %c2_i32_22, %c1_i32_10 : i32
    %c1_i32_23 = arith.constant 1 : i32
    %59 = arith.addi %58, %c1_i32_23 : i32
    %60 = arith.index_cast %59 : i32 to index
    %61 = memref.load %arg2[%60] : memref<16xf32, #tpu.memory_space<smem>>
    memref.store %54, %arg2[%60] : memref<16xf32, #tpu.memory_space<smem>>
    %c2_i32_24 = arith.constant 2 : i32
    %c2_i32_25 = arith.constant 2 : i32
    %62 = arith.muli %c2_i32_25, %c2_i32_24 : i32
    %63 = arith.index_cast %62 : i32 to index
    %64 = memref.load %arg0[%63] : memref<16xf32, #tpu.memory_space<smem>>
    %c2_i32_26 = arith.constant 2 : i32
    %65 = arith.muli %c2_i32_26, %c2_i32_24 : i32
    %c1_i32_27 = arith.constant 1 : i32
    %66 = arith.addi %65, %c1_i32_27 : i32
    %67 = arith.index_cast %66 : i32 to index
    %68 = memref.load %arg0[%67] : memref<16xf32, #tpu.memory_space<smem>>
    %cst_28 = arith.constant 5.000000e-01 : f32
    %69 = arith.cmpf oge, %64, %cst_28 : f32
    %70 = arith.cmpf oge, %64, %68 : f32
    %71 = arith.andi %69, %70 : i1
    %cst_29 = arith.constant 5.000000e-01 : f32
    %72 = arith.cmpf oge, %68, %cst_29 : f32
    %73 = arith.cmpf ogt, %68, %64 : f32
    %74 = arith.andi %72, %73 : i1
    %cst_30 = arith.constant 1.000000e+00 : f32
    %75 = arith.addf %50, %cst_30 : f32
    %cst_31 = arith.constant 0.000000e+00 : f32
    %76 = arith.cmpf ogt, %50, %cst_31 : f32
    %77 = arith.andi %74, %76 : i1
    %cst_32 = arith.constant 1.000000e+00 : f32
    %78 = arith.subf %50, %cst_32 : f32
    %79 = arith.select %77, %78, %50 : f32
    %80 = arith.select %71, %75, %79 : f32
    %cst_33 = arith.constant 0.000000e+00 : f32
    %81 = arith.cmpf oeq, %50, %cst_33 : f32
    %82 = arith.andi %74, %81 : i1
    %cst_34 = arith.constant 1.000000e+00 : f32
    %83 = arith.addf %54, %cst_34 : f32
    %84 = arith.select %82, %83, %54 : f32
    %c2_i32_35 = arith.constant 2 : i32
    %85 = arith.muli %c2_i32_35, %c2_i32_24 : i32
    %86 = arith.index_cast %85 : i32 to index
    %87 = memref.load %arg2[%86] : memref<16xf32, #tpu.memory_space<smem>>
    memref.store %80, %arg2[%86] : memref<16xf32, #tpu.memory_space<smem>>
    %c2_i32_36 = arith.constant 2 : i32
    %88 = arith.muli %c2_i32_36, %c2_i32_24 : i32
    %c1_i32_37 = arith.constant 1 : i32
    %89 = arith.addi %88, %c1_i32_37 : i32
    %90 = arith.index_cast %89 : i32 to index
    %91 = memref.load %arg2[%90] : memref<16xf32, #tpu.memory_space<smem>>
    memref.store %84, %arg2[%90] : memref<16xf32, #tpu.memory_space<smem>>
    %c3_i32 = arith.constant 3 : i32
    %c2_i32_38 = arith.constant 2 : i32
    %92 = arith.muli %c2_i32_38, %c3_i32 : i32
    %93 = arith.index_cast %92 : i32 to index
    %94 = memref.load %arg0[%93] : memref<16xf32, #tpu.memory_space<smem>>
    %c2_i32_39 = arith.constant 2 : i32
    %95 = arith.muli %c2_i32_39, %c3_i32 : i32
    %c1_i32_40 = arith.constant 1 : i32
    %96 = arith.addi %95, %c1_i32_40 : i32
    %97 = arith.index_cast %96 : i32 to index
    %98 = memref.load %arg0[%97] : memref<16xf32, #tpu.memory_space<smem>>
    %cst_41 = arith.constant 5.000000e-01 : f32
    %99 = arith.cmpf oge, %94, %cst_41 : f32
    %100 = arith.cmpf oge, %94, %98 : f32
    %101 = arith.andi %99, %100 : i1
    %cst_42 = arith.constant 5.000000e-01 : f32
    %102 = arith.cmpf oge, %98, %cst_42 : f32
    %103 = arith.cmpf ogt, %98, %94 : f32
    %104 = arith.andi %102, %103 : i1
    %cst_43 = arith.constant 1.000000e+00 : f32
    %105 = arith.addf %80, %cst_43 : f32
    %cst_44 = arith.constant 0.000000e+00 : f32
    %106 = arith.cmpf ogt, %80, %cst_44 : f32
    %107 = arith.andi %104, %106 : i1
    %cst_45 = arith.constant 1.000000e+00 : f32
    %108 = arith.subf %80, %cst_45 : f32
    %109 = arith.select %107, %108, %80 : f32
    %110 = arith.select %101, %105, %109 : f32
    %cst_46 = arith.constant 0.000000e+00 : f32
    %111 = arith.cmpf oeq, %80, %cst_46 : f32
    %112 = arith.andi %104, %111 : i1
    %cst_47 = arith.constant 1.000000e+00 : f32
    %113 = arith.addf %84, %cst_47 : f32
    %114 = arith.select %112, %113, %84 : f32
    %c2_i32_48 = arith.constant 2 : i32
    %115 = arith.muli %c2_i32_48, %c3_i32 : i32
    %116 = arith.index_cast %115 : i32 to index
    %117 = memref.load %arg2[%116] : memref<16xf32, #tpu.memory_space<smem>>
    memref.store %110, %arg2[%116] : memref<16xf32, #tpu.memory_space<smem>>
    %c2_i32_49 = arith.constant 2 : i32
    %118 = arith.muli %c2_i32_49, %c3_i32 : i32
    %c1_i32_50 = arith.constant 1 : i32
    %119 = arith.addi %118, %c1_i32_50 : i32
    %120 = arith.index_cast %119 : i32 to index
    %121 = memref.load %arg2[%120] : memref<16xf32, #tpu.memory_space<smem>>
    memref.store %114, %arg2[%120] : memref<16xf32, #tpu.memory_space<smem>>
    %c4_i32 = arith.constant 4 : i32
    %c2_i32_51 = arith.constant 2 : i32
    %122 = arith.muli %c2_i32_51, %c4_i32 : i32
    %123 = arith.index_cast %122 : i32 to index
    %124 = memref.load %arg0[%123] : memref<16xf32, #tpu.memory_space<smem>>
    %c2_i32_52 = arith.constant 2 : i32
    %125 = arith.muli %c2_i32_52, %c4_i32 : i32
    %c1_i32_53 = arith.constant 1 : i32
    %126 = arith.addi %125, %c1_i32_53 : i32
    %127 = arith.index_cast %126 : i32 to index
    %128 = memref.load %arg0[%127] : memref<16xf32, #tpu.memory_space<smem>>
    %cst_54 = arith.constant 5.000000e-01 : f32
    %129 = arith.cmpf oge, %124, %cst_54 : f32
    %130 = arith.cmpf oge, %124, %128 : f32
    %131 = arith.andi %129, %130 : i1
    %cst_55 = arith.constant 5.000000e-01 : f32
    %132 = arith.cmpf oge, %128, %cst_55 : f32
    %133 = arith.cmpf ogt, %128, %124 : f32
    %134 = arith.andi %132, %133 : i1
    %cst_56 = arith.constant 1.000000e+00 : f32
    %135 = arith.addf %110, %cst_56 : f32
    %cst_57 = arith.constant 0.000000e+00 : f32
    %136 = arith.cmpf ogt, %110, %cst_57 : f32
    %137 = arith.andi %134, %136 : i1
    %cst_58 = arith.constant 1.000000e+00 : f32
    %138 = arith.subf %110, %cst_58 : f32
    %139 = arith.select %137, %138, %110 : f32
    %140 = arith.select %131, %135, %139 : f32
    %cst_59 = arith.constant 0.000000e+00 : f32
    %141 = arith.cmpf oeq, %110, %cst_59 : f32
    %142 = arith.andi %134, %141 : i1
    %cst_60 = arith.constant 1.000000e+00 : f32
    %143 = arith.addf %114, %cst_60 : f32
    %144 = arith.select %142, %143, %114 : f32
    %c2_i32_61 = arith.constant 2 : i32
    %145 = arith.muli %c2_i32_61, %c4_i32 : i32
    %146 = arith.index_cast %145 : i32 to index
    %147 = memref.load %arg2[%146] : memref<16xf32, #tpu.memory_space<smem>>
    memref.store %140, %arg2[%146] : memref<16xf32, #tpu.memory_space<smem>>
    %c2_i32_62 = arith.constant 2 : i32
    %148 = arith.muli %c2_i32_62, %c4_i32 : i32
    %c1_i32_63 = arith.constant 1 : i32
    %149 = arith.addi %148, %c1_i32_63 : i32
    %150 = arith.index_cast %149 : i32 to index
    %151 = memref.load %arg2[%150] : memref<16xf32, #tpu.memory_space<smem>>
    memref.store %144, %arg2[%150] : memref<16xf32, #tpu.memory_space<smem>>
    %c5_i32 = arith.constant 5 : i32
    %c2_i32_64 = arith.constant 2 : i32
    %152 = arith.muli %c2_i32_64, %c5_i32 : i32
    %153 = arith.index_cast %152 : i32 to index
    %154 = memref.load %arg0[%153] : memref<16xf32, #tpu.memory_space<smem>>
    %c2_i32_65 = arith.constant 2 : i32
    %155 = arith.muli %c2_i32_65, %c5_i32 : i32
    %c1_i32_66 = arith.constant 1 : i32
    %156 = arith.addi %155, %c1_i32_66 : i32
    %157 = arith.index_cast %156 : i32 to index
    %158 = memref.load %arg0[%157] : memref<16xf32, #tpu.memory_space<smem>>
    %cst_67 = arith.constant 5.000000e-01 : f32
    %159 = arith.cmpf oge, %154, %cst_67 : f32
    %160 = arith.cmpf oge, %154, %158 : f32
    %161 = arith.andi %159, %160 : i1
    %cst_68 = arith.constant 5.000000e-01 : f32
    %162 = arith.cmpf oge, %158, %cst_68 : f32
    %163 = arith.cmpf ogt, %158, %154 : f32
    %164 = arith.andi %162, %163 : i1
    %cst_69 = arith.constant 1.000000e+00 : f32
    %165 = arith.addf %140, %cst_69 : f32
    %cst_70 = arith.constant 0.000000e+00 : f32
    %166 = arith.cmpf ogt, %140, %cst_70 : f32
    %167 = arith.andi %164, %166 : i1
    %cst_71 = arith.constant 1.000000e+00 : f32
    %168 = arith.subf %140, %cst_71 : f32
    %169 = arith.select %167, %168, %140 : f32
    %170 = arith.select %161, %165, %169 : f32
    %cst_72 = arith.constant 0.000000e+00 : f32
    %171 = arith.cmpf oeq, %140, %cst_72 : f32
    %172 = arith.andi %164, %171 : i1
    %cst_73 = arith.constant 1.000000e+00 : f32
    %173 = arith.addf %144, %cst_73 : f32
    %174 = arith.select %172, %173, %144 : f32
    %c2_i32_74 = arith.constant 2 : i32
    %175 = arith.muli %c2_i32_74, %c5_i32 : i32
    %176 = arith.index_cast %175 : i32 to index
    %177 = memref.load %arg2[%176] : memref<16xf32, #tpu.memory_space<smem>>
    memref.store %170, %arg2[%176] : memref<16xf32, #tpu.memory_space<smem>>
    %c2_i32_75 = arith.constant 2 : i32
    %178 = arith.muli %c2_i32_75, %c5_i32 : i32
    %c1_i32_76 = arith.constant 1 : i32
    %179 = arith.addi %178, %c1_i32_76 : i32
    %180 = arith.index_cast %179 : i32 to index
    %181 = memref.load %arg2[%180] : memref<16xf32, #tpu.memory_space<smem>>
    memref.store %174, %arg2[%180] : memref<16xf32, #tpu.memory_space<smem>>
    %c6_i32 = arith.constant 6 : i32
    %c2_i32_77 = arith.constant 2 : i32
    %182 = arith.muli %c2_i32_77, %c6_i32 : i32
    %183 = arith.index_cast %182 : i32 to index
    %184 = memref.load %arg0[%183] : memref<16xf32, #tpu.memory_space<smem>>
    %c2_i32_78 = arith.constant 2 : i32
    %185 = arith.muli %c2_i32_78, %c6_i32 : i32
    %c1_i32_79 = arith.constant 1 : i32
    %186 = arith.addi %185, %c1_i32_79 : i32
    %187 = arith.index_cast %186 : i32 to index
    %188 = memref.load %arg0[%187] : memref<16xf32, #tpu.memory_space<smem>>
    %cst_80 = arith.constant 5.000000e-01 : f32
    %189 = arith.cmpf oge, %184, %cst_80 : f32
    %190 = arith.cmpf oge, %184, %188 : f32
    %191 = arith.andi %189, %190 : i1
    %cst_81 = arith.constant 5.000000e-01 : f32
    %192 = arith.cmpf oge, %188, %cst_81 : f32
    %193 = arith.cmpf ogt, %188, %184 : f32
    %194 = arith.andi %192, %193 : i1
    %cst_82 = arith.constant 1.000000e+00 : f32
    %195 = arith.addf %170, %cst_82 : f32
    %cst_83 = arith.constant 0.000000e+00 : f32
    %196 = arith.cmpf ogt, %170, %cst_83 : f32
    %197 = arith.andi %194, %196 : i1
    %cst_84 = arith.constant 1.000000e+00 : f32
    %198 = arith.subf %170, %cst_84 : f32
    %199 = arith.select %197, %198, %170 : f32
    %200 = arith.select %191, %195, %199 : f32
    %cst_85 = arith.constant 0.000000e+00 : f32
    %201 = arith.cmpf oeq, %170, %cst_85 : f32
    %202 = arith.andi %194, %201 : i1
    %cst_86 = arith.constant 1.000000e+00 : f32
    %203 = arith.addf %174, %cst_86 : f32
    %204 = arith.select %202, %203, %174 : f32
    %c2_i32_87 = arith.constant 2 : i32
    %205 = arith.muli %c2_i32_87, %c6_i32 : i32
    %206 = arith.index_cast %205 : i32 to index
    %207 = memref.load %arg2[%206] : memref<16xf32, #tpu.memory_space<smem>>
    memref.store %200, %arg2[%206] : memref<16xf32, #tpu.memory_space<smem>>
    %c2_i32_88 = arith.constant 2 : i32
    %208 = arith.muli %c2_i32_88, %c6_i32 : i32
    %c1_i32_89 = arith.constant 1 : i32
    %209 = arith.addi %208, %c1_i32_89 : i32
    %210 = arith.index_cast %209 : i32 to index
    %211 = memref.load %arg2[%210] : memref<16xf32, #tpu.memory_space<smem>>
    memref.store %204, %arg2[%210] : memref<16xf32, #tpu.memory_space<smem>>
    %c7_i32 = arith.constant 7 : i32
    %c2_i32_90 = arith.constant 2 : i32
    %212 = arith.muli %c2_i32_90, %c7_i32 : i32
    %213 = arith.index_cast %212 : i32 to index
    %214 = memref.load %arg0[%213] : memref<16xf32, #tpu.memory_space<smem>>
    %c2_i32_91 = arith.constant 2 : i32
    %215 = arith.muli %c2_i32_91, %c7_i32 : i32
    %c1_i32_92 = arith.constant 1 : i32
    %216 = arith.addi %215, %c1_i32_92 : i32
    %217 = arith.index_cast %216 : i32 to index
    %218 = memref.load %arg0[%217] : memref<16xf32, #tpu.memory_space<smem>>
    %cst_93 = arith.constant 5.000000e-01 : f32
    %219 = arith.cmpf oge, %214, %cst_93 : f32
    %220 = arith.cmpf oge, %214, %218 : f32
    %221 = arith.andi %219, %220 : i1
    %cst_94 = arith.constant 5.000000e-01 : f32
    %222 = arith.cmpf oge, %218, %cst_94 : f32
    %223 = arith.cmpf ogt, %218, %214 : f32
    %224 = arith.andi %222, %223 : i1
    %cst_95 = arith.constant 1.000000e+00 : f32
    %225 = arith.addf %200, %cst_95 : f32
    %cst_96 = arith.constant 0.000000e+00 : f32
    %226 = arith.cmpf ogt, %200, %cst_96 : f32
    %227 = arith.andi %224, %226 : i1
    %cst_97 = arith.constant 1.000000e+00 : f32
    %228 = arith.subf %200, %cst_97 : f32
    %229 = arith.select %227, %228, %200 : f32
    %230 = arith.select %221, %225, %229 : f32
    %cst_98 = arith.constant 0.000000e+00 : f32
    %231 = arith.cmpf oeq, %200, %cst_98 : f32
    %232 = arith.andi %224, %231 : i1
    %cst_99 = arith.constant 1.000000e+00 : f32
    %233 = arith.addf %204, %cst_99 : f32
    %234 = arith.select %232, %233, %204 : f32
    %c2_i32_100 = arith.constant 2 : i32
    %235 = arith.muli %c2_i32_100, %c7_i32 : i32
    %236 = arith.index_cast %235 : i32 to index
    %237 = memref.load %arg2[%236] : memref<16xf32, #tpu.memory_space<smem>>
    memref.store %230, %arg2[%236] : memref<16xf32, #tpu.memory_space<smem>>
    %c2_i32_101 = arith.constant 2 : i32
    %238 = arith.muli %c2_i32_101, %c7_i32 : i32
    %c1_i32_102 = arith.constant 1 : i32
    %239 = arith.addi %238, %c1_i32_102 : i32
    %240 = arith.index_cast %239 : i32 to index
    %241 = memref.load %arg2[%240] : memref<16xf32, #tpu.memory_space<smem>>
    memref.store %234, %arg2[%240] : memref<16xf32, #tpu.memory_space<smem>>
    %c8_i32 = arith.constant 8 : i32
    return
  }
}

</mosaic_0001>

<bundles_post_ra>
// kernel: _dnnc_segment_impl.1
= control target key start
LH: loop header
LB: loop body
LE: loop exit
PB: predicated region body
PF: predicated region fallthrough
CT: control target
= control target key end

     0   :  { %7 = vsyncpa [#allocation3], 0  ;;  %s485_s0 = inlined_call_operand.vmem [shape: f32[16], index: 0, kind: input, shape index: {}, may-alias: {0,2}]   ;;  %s486_s1 = inlined_call_operand.vmem [shape: f32[2], index: 1, kind: input, shape index: {}]   ;;  %s487_s2 = inlined_call_operand.vmem [shape: f32[16], index: 2, kind: output, shape index: {}, may-alias: {0,2}]  }
   0x1   :  { %8 = vsyncpa [#allocation6], 0 }
   0x2   :  { %9 = vsyncpa [#allocation4], 0  ;;  %s16_s11 = sshll.u32 %s485_s0, 4  ;;  %s26_s14 = sshll.u32 %s486_s1, 4  ;;  %s17_s11 = int_to_ptr.vmem [resolvable:$true] %s16_s11  ;;  %s27_s14 = int_to_ptr.vmem [resolvable:$true] %s26_s14 }
   0x3   :  { %s315_s15 = scalar_lea.vmem %s17_s11, 16  ;;  %p320_p1 = scmp.lt.s32.totalorder %s17_s11, %s17_s11 }
   0x4   :  { %p316_p0 = scmp.ne.s32.totalorder %s17_s11, %s315_s15  ;;  %p321_p2 = scmp.lt.s32.totalorder %s315_s15, %s315_s15 }
   0x6   :  { %p322_p3 = por %p321_p2, %p320_p1 }
   0x8   :  { %p323_p4 = pnand %p322_p3, %p316_p0 }
   0xa   :  { %326 = shalt.err (!%p323_p4)
}
   0xb   :  { %s357_s16 = smov [#allocation2]   ;;  %s327_s17 = scalar_lea.vmem %s27_s14, 16 }
   0xc   :  { %19 = dma.vmem_to_smem %s17_s11, 16, %s357_s16, [#allocation3]  }
   0xd   :  { %p328_p5 = scmp.ne.s32.totalorder %s27_s14, %s327_s17  ;;  %p332_p6 = scmp.lt.s32.totalorder %s27_s14, %s27_s14 }
   0xe   :  { %p333_p7 = scmp.lt.s32.totalorder %s327_s17, %s327_s17 }
  0x10   :  { %p334_p8 = por %p333_p7, %p332_p6 }
  0x12   :  { %p335_p9 = pnand %p334_p8, %p328_p5 }
  0x14   :  { %338 = shalt.err (!%p335_p9)
}
  0x15   :  { %s358_s0 = smov [#allocation5]  }
  0x16   :  { %29 = dma.vmem_to_smem %s27_s14, 16, %s358_s0, [#allocation6]  }
  0x17   :  { %351 = dma.done.wait [#allocation3], 16  }
  0x18   :  { %352 = vsyncadd [#allocation3], 4294967280 }
  0x19   :  { %353 = dma.done.wait [#allocation6], 16  }
  0x1a   :  { %354 = vsyncadd [#allocation6], 4294967280 }
  0x1b   :  { %36 = sfence }
  0x1c   :  { %s381_s1 = sld [smem:[#allocation5]]  ;;  %s383_s18 = sld [smem:[#allocation5 + $0x1]] }
  0x1d   :  { %s39_s19 = sld [smem:[#allocation2]]  ;;  %s265_s20 = sld [smem:[#allocation2 + $0x1]] }
  0x1e   :  { %s270_s21 = sld [smem:[#allocation2 + $0x2]]  ;;  %s271_s22 = sld [smem:[#allocation2 + $0x3]] }
  0x1f   :  { %s385_s23 = sld [smem:[#allocation2 + $0x4]]  ;;  %s387_s24 = sld [smem:[#allocation2 + $0x5]] }
  0x20   :  { %s389_s25 = sld [smem:[#allocation2 + $0x6]]  ;;  %s391_s26 = sld [smem:[#allocation2 + $0x7]] }
  0x21   :  { %s393_s27 = sld [smem:[#allocation2 + $0x8]]  ;;  %s395_s28 = sld [smem:[#allocation2 + $0x9]] }
  0x22   :  { %s49_s29 = sadd.f32 1.0, %s381_s1  ;;  %p50_p10 = scmp.gt.f32.partialorder %s381_s1, 0.0 }
  0x23   :  { %p41_p11 = scmp.ge.f32.partialorder %s39_s19, 0.5  ;;  %p42_p12 = scmp.ge.f32.partialorder %s39_s19, %s265_s20 }
  0x24   :  { %p45_p13 = scmp.ge.f32.partialorder %s265_s20, 0.5  ;;  %p46_p0 = scmp.gt.f32.partialorder %s265_s20, %s39_s19 }
  0x25   :  { %p399_p1 = pnand %p42_p12, %p41_p11  ;;  %s266_s3 = sadd.f32 -1.0, %s381_s1 }
  0x26   :  { %p47_p2 = pnand %p46_p0, %p45_p13  ;;  %p56_p3 = scmp.eq.f32.partialorder %s381_s1, 0.0 }
  0x27   :  { %s488_s30 = scalar_select %p399_p1, 1, 0 }
  0x28   :  { %s59_s4 = sadd.f32 1.0, %s383_s18  ;;  %p67_p4 = scmp.ge.f32.partialorder %s270_s21, 0.5 }
  0x29   :  { %p48_p5 = pneg %p47_p2  ;;  %p68_p6 = scmp.ge.f32.partialorder %s270_s21, %s271_s22 }
  0x2a   :  { %p71_p7 = scmp.ge.f32.partialorder %s271_s22, 0.5  ;;  %p72_p8 = scmp.gt.f32.partialorder %s271_s22, %s270_s21 }
  0x2b   :  { %p51_p9 = pnand %p50_p10, %p48_p5  ;;  %p57_p11 = pnand %p56_p3, %p48_p5 }
  0x2c   :  { %p408_p12 = pnand %p68_p6, %p67_p4  ;;  %p412_p1 = pnand %p72_p8, %p71_p7 }
  0x2d   :  { %s498_s1 = smov (!%p51_p9, %s381_s1), %s266_s3  ;;  %s500_s18 = smov (!%p57_p11, %s383_s18), %s59_s4 }
  0x2e   :  { %p491_p13 = scmp.ne.s32.totalorder %s488_s30, 0  ;;  %64 = sst [smem:[#allocation7 + $0x1]] %s500_s18 }
  0x2f   :  { %p74_p10 = pneg %p412_p1  ;;  %s85_s9 = sadd.f32 1.0, %s500_s18 }
  0x30   :  { %s502_s1 = smov (!%p491_p13, %s498_s1), %s49_s29  ;;  %p93_p1 = scmp.ge.f32.partialorder %s385_s23, 0.5 }
  0x31   :  { %62 = sst [smem:[#allocation7]] %s502_s1  ;;  %p76_p0 = scmp.gt.f32.partialorder %s502_s1, 0.0 }
  0x32   :  { %s75_s7 = sadd.f32 1.0, %s502_s1  ;;  %p82_p2 = scmp.eq.f32.partialorder %s502_s1, 0.0 }
  0x33   :  { %p77_p3 = pnand %p76_p0, %p74_p10  ;;  %s272_s8 = sadd.f32 -1.0, %s502_s1 }
  0x34   :  { %p83_p4 = pnand %p82_p2, %p74_p10  ;;  %p94_p5 = scmp.ge.f32.partialorder %s385_s23, %s387_s24 }
  0x35   :  { %s504_s1 = smov (!%p77_p3, %s502_s1), %s272_s8  ;;  %p97_p6 = scmp.ge.f32.partialorder %s387_s24, 0.5 }
  0x36   :  { %s506_s18 = smov (!%p83_p4, %s500_s18), %s85_s9  ;;  %s508_s1 = smov (!%p408_p12, %s504_s1), %s75_s7 }
  0x37   :  { %90 = sst [smem:[#allocation7 + $0x3]] %s506_s18  ;;  %p98_p7 = scmp.gt.f32.partialorder %s387_s24, %s385_s23 }
  0x38   :  { %88 = sst [smem:[#allocation7 + $0x2]] %s508_s1  ;;  %p430_p8 = pnand %p94_p5, %p93_p1 }
  0x39   :  { %s101_s11 = sadd.f32 1.0, %s508_s1  ;;  %p99_p9 = pnand %p98_p7, %p97_p6 }
  0x3a   :  { %p102_p11 = scmp.gt.f32.partialorder %s508_s1, 0.0  ;;  %s278_s12 = sadd.f32 -1.0, %s508_s1 }
  0x3b   :  { %p108_p12 = scmp.eq.f32.partialorder %s508_s1, 0.0  ;;  %p100_p13 = pneg %p99_p9 }
  0x3c   :  { %s111_s13 = sadd.f32 1.0, %s506_s18  ;;  %p119_p10 = scmp.ge.f32.partialorder %s389_s25, 0.5 }
  0x3d   :  { %p120_p0 = scmp.ge.f32.partialorder %s389_s25, %s391_s26  ;;  %p103_p2 = pnand %p102_p11, %p100_p13 }
  0x3e   :  { %p109_p3 = pnand %p108_p12, %p100_p13  ;;  %p123_p1 = scmp.ge.f32.partialorder %s391_s26, 0.5 }
  0x3f   :  { %p437_p4 = pnand %p120_p0, %p119_p10  ;;  %s510_s1 = smov (!%p103_p2, %s508_s1), %s278_s12 }
  0x40   :  { %s512_s18 = smov (!%p109_p3, %s506_s18), %s111_s13  ;;  %s514_s1 = smov (!%p430_p8, %s510_s1), %s101_s11 }
  0x41   :  { %116 = sst [smem:[#allocation7 + $0x5]] %s512_s18  ;;  %p124_p5 = scmp.gt.f32.partialorder %s391_s26, %s389_s25 }
  0x42   :  { %114 = sst [smem:[#allocation7 + $0x4]] %s514_s1  ;;  %p128_p6 = scmp.gt.f32.partialorder %s514_s1, 0.0 }
  0x43   :  { %p125_p7 = pnand %p124_p5, %p123_p1  ;;  %s127_s15 = sadd.f32 1.0, %s514_s1 }
  0x44   :  { %s284_s16 = sadd.f32 -1.0, %s514_s1  ;;  %p134_p9 = scmp.eq.f32.partialorder %s514_s1, 0.0 }
  0x45   :  { %p126_p11 = pneg %p125_p7  ;;  %s137_s17 = sadd.f32 1.0, %s512_s18 }
  0x46   :  { %p145_p12 = scmp.ge.f32.partialorder %s393_s27, 0.5  ;;  %p146_p13 = scmp.ge.f32.partialorder %s393_s27, %s395_s28 }
  0x47   :  { %p129_p10 = pnand %p128_p6, %p126_p11  ;;  %p135_p0 = pnand %p134_p9, %p126_p11 }
  0x48   :  { %p449_p2 = pnand %p146_p13, %p145_p12  ;;  %p149_p8 = scmp.ge.f32.partialorder %s395_s28, 0.5 }
  0x49   :  { %s516_s1 = smov (!%p129_p10, %s514_s1), %s284_s16  ;;  %s518_s18 = smov (!%p135_p0, %s512_s18), %s137_s17 }
  0x4a   :  { %s520_s1 = smov (!%p437_p4, %s516_s1), %s127_s15  ;;  %142 = sst [smem:[#allocation7 + $0x7]] %s518_s18 }
  0x4b   :  { %p150_p3 = scmp.gt.f32.partialorder %s395_s28, %s393_s27  ;;  %140 = sst [smem:[#allocation7 + $0x6]] %s520_s1 }
  0x4c   :  { %p154_p1 = scmp.gt.f32.partialorder %s520_s1, 0.0  ;;  %s153_s19 = sadd.f32 1.0, %s520_s1 }
  0x4d   :  { %p151_p5 = pnand %p150_p3, %p149_p8  ;;  %s290_s20 = sadd.f32 -1.0, %s520_s1 }
  0x4e   :  { %p160_p7 = scmp.eq.f32.partialorder %s520_s1, 0.0  ;;  %s163_s21 = sadd.f32 1.0, %s518_s18 }
  0x4f   :  { %p152_p6 = pneg %p151_p5  ;;  %s294_s22 = sld [smem:[#allocation2 + $0xa]] }
  0x50   :  { %s295_s23 = sld [smem:[#allocation2 + $0xb]]  ;;  %s458_s24 = sld [smem:[#allocation2 + $0xc]] }
  0x51   :  { %p155_p9 = pnand %p154_p1, %p152_p6  ;;  %p161_p11 = pnand %p160_p7, %p152_p6 }
  0x52   :  { %s460_s25 = sld [smem:[#allocation2 + $0xd]]  ;;  %s306_s6 = sld [smem:[#allocation2 + $0xe]] }
  0x53   :  { %s522_s1 = smov (!%p155_p9, %s520_s1), %s290_s20  ;;  %s524_s18 = smov (!%p161_p11, %s518_s18), %s163_s21 }
  0x54   :  { %s526_s1 = smov (!%p449_p2, %s522_s1), %s153_s19  ;;  %168 = sst [smem:[#allocation7 + $0x9]] %s524_s18 }
  0x55   :  { %p171_p4 = scmp.ge.f32.partialorder %s294_s22, 0.5  ;;  %166 = sst [smem:[#allocation7 + $0x8]] %s526_s1 }
  0x56   :  { %p172_p12 = scmp.ge.f32.partialorder %s294_s22, %s295_s23  ;;  %p175_p13 = scmp.ge.f32.partialorder %s295_s23, 0.5 }
  0x57   :  { %p176_p10 = scmp.gt.f32.partialorder %s295_s23, %s294_s22  ;;  %s179_s27 = sadd.f32 1.0, %s526_s1 }
  0x58   :  { %p464_p0 = pnand %p172_p12, %p171_p4  ;;  %p180_p3 = scmp.gt.f32.partialorder %s526_s1, 0.0 }
  0x59   :  { %p177_p8 = pnand %p176_p10, %p175_p13  ;;  %s296_s28 = sadd.f32 -1.0, %s526_s1 }
  0x5a   :  { %p186_p2 = scmp.eq.f32.partialorder %s526_s1, 0.0  ;;  %s189_s29 = sadd.f32 1.0, %s524_s18 }
  0x5b   :  { %p178_p1 = pneg %p177_p8  ;;  %p197_p5 = scmp.ge.f32.partialorder %s458_s24, 0.5 }
  0x5c   :  { %p198_p7 = scmp.ge.f32.partialorder %s458_s24, %s460_s25  ;;  %p201_p4 = scmp.ge.f32.partialorder %s460_s25, 0.5 }
  0x5d   :  { %p181_p6 = pnand %p180_p3, %p178_p1  ;;  %p187_p9 = pnand %p186_p2, %p178_p1 }
  0x5e   :  { %p471_p11 = pnand %p198_p7, %p197_p5  ;;  %p202_p12 = scmp.gt.f32.partialorder %s460_s25, %s458_s24 }
  0x5f   :  { %s528_s1 = smov (!%p181_p6, %s526_s1), %s296_s28  ;;  %s530_s18 = smov (!%p187_p9, %s524_s18), %s189_s29 }
  0x60   :  { %s532_s1 = smov (!%p464_p0, %s528_s1), %s179_s27  ;;  %194 = sst [smem:[#allocation7 + $0xb]] %s530_s18 }
  0x61   :  { %192 = sst [smem:[#allocation7 + $0xa]] %s532_s1  ;;  %p206_p13 = scmp.gt.f32.partialorder %s532_s1, 0.0 }
  0x62   :  { %p203_p10 = pnand %p202_p12, %p201_p4  ;;  %s205_s3 = sadd.f32 1.0, %s532_s1 }
  0x63   :  { %s302_s4 = sadd.f32 -1.0, %s532_s1  ;;  %p212_p8 = scmp.eq.f32.partialorder %s532_s1, 0.0 }
  0x64   :  { %p204_p3 = pneg %p203_p10  ;;  %s215_s5 = sadd.f32 1.0, %s530_s18 }
  0x65   :  { %s307_s7 = sld [smem:[#allocation2 + $0xf]]  ;;  %s253_s10 = sshll.u32 %s487_s2, 4  ;;  %s254_s10 = int_to_ptr.vmem [resolvable:$true] %s253_s10 }
  0x66   :  { %p207_p2 = pnand %p206_p13, %p204_p3  ;;  %p213_p1 = pnand %p212_p8, %p204_p3 }
  0x67   :  { %p223_p7 = scmp.ge.f32.partialorder %s306_s6, 0.5  ;;  %s339_s2 = scalar_lea.vmem %s254_s10, 16 }
  0x68   :  { %s534_s1 = smov (!%p207_p2, %s532_s1), %s302_s4  ;;  %s536_s18 = smov (!%p213_p1, %s530_s18), %s215_s5 }
  0x69   :  { %s538_s1 = smov (!%p471_p11, %s534_s1), %s205_s3  ;;  %220 = sst [smem:[#allocation7 + $0xd]] %s536_s18 }
  0x6a   :  { %218 = sst [smem:[#allocation7 + $0xc]] %s538_s1  ;;  %p232_p4 = scmp.gt.f32.partialorder %s538_s1, 0.0 }
  0x6b   :  { %p227_p0 = scmp.ge.f32.partialorder %s307_s7, 0.5  ;;  %p228_p5 = scmp.gt.f32.partialorder %s307_s7, %s306_s6 }
  0x6c   :  { %p224_p6 = scmp.ge.f32.partialorder %s306_s6, %s307_s7  ;;  %s231_s11 = sadd.f32 1.0, %s538_s1 }
  0x6d   :  { %p229_p9 = pnand %p228_p5, %p227_p0  ;;  %p238_p12 = scmp.eq.f32.partialorder %s538_s1, 0.0 }
  0x6e   :  { %s308_s12 = sadd.f32 -1.0, %s538_s1  ;;  %p225_p10 = pnand %p224_p6, %p223_p7 }
  0x6f   :  { %p230_p13 = pneg %p229_p9  ;;  %s241_s13 = sadd.f32 1.0, %s536_s18 }
  0x70   :  { %p340_p3 = scmp.ne.s32.totalorder %s254_s10, %s339_s2  ;;  %p344_p2 = scmp.lt.s32.totalorder %s254_s10, %s254_s10 }
  0x71   :  { %p233_p8 = pnand %p232_p4, %p230_p13  ;;  %p239_p11 = pnand %p238_p12, %p230_p13 }
  0x72   :  { %p345_p1 = scmp.lt.s32.totalorder %s339_s2, %s339_s2 }
  0x73   :  { %s540_s1 = smov (!%p233_p8, %s538_s1), %s308_s12  ;;  %s542_s18 = smov (!%p239_p11, %s536_s18), %s241_s13 }
  0x74   :  { %s544_s1 = smov (!%p225_p10, %s540_s1), %s231_s11  ;;  %246 = sst [smem:[#allocation7 + $0xf]] %s542_s18 }
  0x75   :  { %244 = sst [smem:[#allocation7 + $0xe]] %s544_s1  ;;  %p346_p0 = por %p345_p1, %p344_p2 }
  0x77   :  { %p347_p5 = pnand %p346_p0, %p340_p3 }
  0x79   :  { %350 = shalt.err (!%p347_p5)
}
  0x7a   :  { %s359_s14 = smov [#allocation7]  }
  0x7b   :  { %256 = dma.smem_to_vmem %s359_s14, 16, %s254_s10, [#allocation4]  }
  0x7c   :  { %355 = dma.done.wait [#allocation4], 16  }
  0x7d   :  { %356 = vsyncadd [#allocation4], 4294967280 }
  0x7e   :  { %260 = sfence }
  0x7f   :  { %261 = vsyncpa [#allocation3], 1 }
  0x80   :  { %262 = vsyncpa [#allocation6], 1 }
  0x81   :  { %263 = vsyncpa [#allocation4], 1 }

</bundles_post_ra>
